<compile_context>
chip_gen: v6e
topology: v6e:2x2x1
jax: 0.10.0
libtpu: 0.0.40
codegen_flags: <defaults>
</compile_context>

<pallas_src>
import functools

import jax
import jax.numpy as jnp
from jax.experimental import pallas as pl
from jax.experimental.pallas import tpu as pltpu


LANE = 128


def _round_up(x, m):
    return (x + m - 1) // m * m


# ----------------------------- Pallas kernel ------------------------------------------


def _shift_left(a, off):
    """a[:, t] <- a[:, t + off]; the last `off` lanes become zero.

    Constant-shape lane shift.  The zero/junk lanes only ever land in the padded tail
    of each batch slab (< rf lanes), which the wrapper slices off.
    (Could be pltpu.roll on the XLU; kept as slice+concat for unambiguous semantics.)
    """
    if off == 0:
        return a
    pad = jnp.zeros((a.shape[0], off), a.dtype)
    return jnp.concatenate([a[:, off:], pad], axis=1)


def rectcn_kernel(x_ref, w0_ref, b0_ref, wr_ref, br_ref, wp_ref, bp_ref, o_ref,
                  *, ksize, n_blocks):
    w0 = w0_ref[...]   # (H, K*Cin)  bf16
    wr = wr_ref[...]   # (H, K*H)    bf16
    wp = wp_ref[...]   # (Cout, H)   bf16
    b0 = b0_ref[...]   # (H, 1)      f32
    br = br_ref[...]   # (H, 1)      f32
    bp = bp_ref[...]   # (Cout, 1)   f32

    def conv(h_bf, w_flat, bias, d):
        # h_bf: (C, N) bf16.  Fused K-tap dilated conv as ONE MXU matmul; the im2col
        # stack is built directly in bf16 (stack row kk*C + c == w_flat column).
        taps = [h_bf] + [_shift_left(h_bf, kk * d) for kk in range(1, ksize)]
        stack = jnp.concatenate(taps, axis=0)                       # (K*C, N) bf16
        y = jnp.dot(w_flat, stack, preferred_element_type=jnp.float32)
        return y + bias, taps[-1]

    h = x_ref[...]                                                  # (Cin, N) bf16

    # first_block: weight-norm conv (dilation=1), use_residual=False, then ReLU.
    # dropout(p=0.0) is the identity and is omitted.
    y, _ = conv(h, w0, b0, 1)
    h = jnp.maximum(y, 0.0).astype(jnp.bfloat16)                    # single bf16 cast/layer

    # recurrent TemporalBlock applied (n_blocks - 1) times, dilation = 2**(i+1).
    # in_channels == out_channels -> down_sample is None; the PyTorch tail-slice
    # residual is exactly the last tap here (offset (K-1)*d), so it's a free add.
    for i in range(n_blocks - 1):
        d = 2 ** (i + 1)
        y, last_tap = conv(h, wr, br, d)
        y = y + last_tap.astype(jnp.float32)
        h = jnp.maximum(y, 0.0).astype(jnp.bfloat16)

    # predictions: kernel_size=1 conv == pointwise matmul; lane-dense store.
    out = jnp.dot(wp, h, preferred_element_type=jnp.float32) + bp
    o_ref[...] = out.astype(o_ref.dtype)


# ----------------------------- wrapper ------------------------------------------------


def _step_vmem_bytes(bb, cin, cout, h, k, l_slab):
    n = bb * l_slab
    io = 2 * (cin * n * 2) + 2 * (cout * n * 4)         # double-buffered in/out blocks
    inter = (k + 2) * h * n * 2 + 2 * h * n * 4         # bf16 taps/stack/h + f32 y/out
    return io + inter


def _pick_batch_block(B, cin, cout, h, k, l_slab, budget=20 * 2 ** 20):
    """Largest divisor of B leaving >= 2 grid steps (when B >= 2) within the budget."""
    best = 1
    for bb in range(1, B + 1):
        if B % bb:
            continue
        if B >= 2 and B // bb < 2:
            continue
        if _step_vmem_bytes(bb, cin, cout, h, k, l_slab) <= budget:
            best = bb
    return best


def recurrent_tcn_forward(x, params, *, kernel_size, n_blocks, batch_block=None):
    """x: (B, Cin, L) float32. Returns (B, Cout, L - receptive_field)."""
    w0f, b0, wrf, br, wpf, bp = params
    B, Cin, L = x.shape
    H = wrf.shape[0]
    Cout = wpf.shape[0]
    K = kernel_size

    rf = (K - 1) * (2 ** n_blocks - 1)
    l_final = L - rf
    assert l_final > 0, "sequence too short for this kernel_size / n_blocks"

    # Constant lane-aligned slab length: valid outputs live in lanes [0, l_final) of
    # each batch slab; everything past that is junk and sliced off below.
    l_slab = _round_up(L, LANE)

    # Pad, cast once to bf16 (MXU operand dtype), relayout batch into the lane axis.
    xp = jnp.pad(x, ((0, 0), (0, 0), (0, l_slab - L))).astype(jnp.bfloat16)
    x2 = jnp.transpose(xp, (1, 0, 2)).reshape(Cin, B * l_slab)

    bb = _pick_batch_block(B, Cin, Cout, H, K, l_slab) if batch_block is None else batch_block
    assert B % bb == 0, "batch_block must divide the batch size"
    grid = (B // bb,)
    n = bb * l_slab                                       # lanes per grid step (mult of 128)

    def _full(a):
        nd = a.ndim
        return pl.BlockSpec(a.shape, lambda i, _nd=nd: (0,) * _nd)

    # Cost estimate: lets XLA overlap surrounding ops with the custom call.
    n_tot = B * l_slab
    flops = 2 * H * (K * Cin) * n_tot
    flops += (n_blocks - 1) * 2 * H * (K * H) * n_tot
    flops += 2 * Cout * H * n_tot
    bytes_accessed = (Cin * n_tot * 2
                      + (w0f.size + wrf.size + wpf.size) * 2
                      + (b0.size + br.size + bp.size) * 4
                      + Cout * n_tot * 4)

    vmem_limit = int(min(64 * 2 ** 20,
                         max(32 * 2 ** 20, 2 * _step_vmem_bytes(bb, Cin, Cout, H, K, l_slab))))

    kfn = functools.partial(rectcn_kernel, ksize=K, n_blocks=n_blocks)

    out2 = pl.pallas_call(
        kfn,
        out_shape=jax.ShapeDtypeStruct((Cout, B * l_slab), jnp.float32),
        grid=grid,
        in_specs=[
            pl.BlockSpec((Cin, n), lambda i: (0, i)),
            _full(w0f), _full(b0),
            _full(wrf), _full(br),
            _full(wpf), _full(bp),
        ],
        out_specs=pl.BlockSpec((Cout, n), lambda i: (0, i)),
        compiler_params=pltpu.CompilerParams(
            dimension_semantics=("parallel",),
            vmem_limit_bytes=vmem_limit),
        cost_estimate=pl.CostEstimate(flops=flops, transcendentals=0,
                                      bytes_accessed=bytes_accessed),
    )(x2, w0f, b0, wrf, br, wpf, bp)

    # Cheap XLA-side layout plumbing + final slice of the junk tail.
    out = out2.reshape(Cout, B, l_slab).transpose(1, 0, 2)[:, :, :l_final]
    return out.astype(x.dtype)


# ----------------------------- parameters (deterministic) ------------------------------


def _weight_norm(v, g):
    """PyTorch weight_norm with dim=0: w = g * v / ||v|| over dims (1, 2)."""
    nrm = jnp.sqrt(jnp.sum(v * v, axis=(1, 2), keepdims=True))
    return g * v / nrm


def _flatten_conv_weight(w):
    """(Co, Ci, K) -> (Co, K*Ci), column index kk*Ci + ci (matches the im2col stack)."""
    Co, Ci, K = w.shape
    return jnp.transpose(w, (0, 2, 1)).reshape(Co, K * Ci)


def init_params(key, in_channels, out_channels, hidden_dim, kernel_size):
    ks = jax.random.split(key, 8)
    scale = 0.2
    # first_block conv: weight-norm Conv1d(in_channels -> hidden_dim, K)
    v0 = jax.random.normal(ks[0], (hidden_dim, in_channels, kernel_size), jnp.float32) * scale
    g0 = 1.0 + 0.1 * jax.random.normal(ks[1], (hidden_dim, 1, 1), jnp.float32)
    w0 = _weight_norm(v0, g0)
    b0 = jax.random.normal(ks[2], (hidden_dim, 1), jnp.float32) * scale
    # recurrent conv: weight-norm Conv1d(hidden_dim -> hidden_dim, K)
    vr = jax.random.normal(ks[3], (hidden_dim, hidden_dim, kernel_size), jnp.float32) * scale
    gr = 1.0 + 0.1 * jax.random.normal(ks[4], (hidden_dim, 1, 1), jnp.float32)
    wr = _weight_norm(vr, gr)
    br = jax.random.normal(ks[5], (hidden_dim, 1), jnp.float32) * scale
    # predictions: Conv1d(hidden_dim -> out_channels, 1) — not weight-normed
    wp = jax.random.normal(ks[6], (out_channels, hidden_dim, 1), jnp.float32) * scale
    bp = jax.random.normal(ks[7], (out_channels, 1), jnp.float32) * scale

    # Fold weight-norm, fuse the K taps (im2col layout), pre-cast MXU operands to bf16.
    w0f = _flatten_conv_weight(w0).astype(jnp.bfloat16)
    wrf = _flatten_conv_weight(wr).astype(jnp.bfloat16)
    wpf = wp[:, :, 0].astype(jnp.bfloat16)
    return (w0f, b0, wrf, br, wpf, bp)


# ----------------------------- pure-JAX reference ---------------------------------------
# Same math as the PyTorch module (defaults), with the same per-layer bf16 activation
# cast and f32 accumulation as the kernel, so the comparison isolates kernel correctness.


def ref_forward(x, params, *, kernel_size, n_blocks):
    w0f, b0, wrf, br, wpf, bp = params
    K = kernel_size

    def conv(h, wf, b, d):
        lo = h.shape[-1] - d * (K - 1)
        stack = jnp.concatenate([h[:, :, kk * d: kk * d + lo] for kk in range(K)], axis=1)
        y = jnp.einsum("ok,bkl->bol", wf, stack, preferred_element_type=jnp.float32)
        return y + b[None]

    h = x.astype(jnp.bfloat16)
    h = jnp.maximum(conv(h, w0f, b0, 1), 0.0).astype(jnp.bfloat16)
    for i in range(n_blocks - 1):
        d = 2 ** (i + 1)
        y = conv(h, wrf, br, d)
        y = y + h[:, :, h.shape[-1] - y.shape[-1]:].astype(jnp.float32)
        h = jnp.maximum(y, 0.0).astype(jnp.bfloat16)
    return jnp.einsum("oh,bhl->bol", wpf, h, preferred_element_type=jnp.float32) + bp[None]


# ----------------------------- main -----------------------------------------------------


if __name__ == "__main__":
    B, Cin, Cout, H, K, NB = 2, 4, 3, 32, 3, 3
    rf = (K - 1) * (2 ** NB - 1)     # total receptive-field shrink = 14
    L = 128 + rf                     # -> l_final = 128 (lane-dense output)

    key = jax.random.PRNGKey(0)
    k_x, k_p = jax.random.split(key)
    x = jax.random.normal(k_x, (B, Cin, L), jnp.float32)
    params = init_params(k_p, Cin, Cout, H, K)

    out = recurrent_tcn_forward(x, params, kernel_size=K, n_blocks=NB)
    out = jax.block_until_ready(out)

    ref = ref_forward(x, params, kernel_size=K, n_blocks=NB)
    assert out.shape == ref.shape, (out.shape, ref.shape)
    assert out.shape == (B, Cout, L - rf), out.shape
    err = float(jnp.max(jnp.abs(out - ref)))
    assert err < 1e-2, err

    print("KERNEL_OK")
</pallas_src>

<mosaic_0001>
module attributes {stable_mosaic.version = 11 : i64} {
  func.func @rectcn_kernel(%arg0: i32, %arg1: memref<4x256xbf16, #tpu.memory_space<vmem>>, %arg2: memref<32x12xbf16, #tpu.memory_space<vmem>>, %arg3: memref<32x1xf32, #tpu.memory_space<vmem>>, %arg4: memref<32x96xbf16, #tpu.memory_space<vmem>>, %arg5: memref<32x1xf32, #tpu.memory_space<vmem>>, %arg6: memref<3x32xbf16, #tpu.memory_space<vmem>>, %arg7: memref<3x1xf32, #tpu.memory_space<vmem>>, %arg8: memref<3x256xf32, #tpu.memory_space<vmem>>) attributes {dimension_semantics = [#tpu.dimension_semantics<parallel>], iteration_bounds = array<i64: 2>, scalar_prefetch = 0 : i64, scratch_operands = 0 : i64, tpu.core_type = #tpu.core_type<tc>, window_params = [{transform_indices = @transform_0, window_bounds = array<i64: 4, 256>}, {pipeline_mode = #tpu.pipeline_mode<synchronous>, transform_indices = @transform_1, window_bounds = array<i64: 32, 12>}, {pipeline_mode = #tpu.pipeline_mode<synchronous>, transform_indices = @transform_2, window_bounds = array<i64: 32, 1>}, {pipeline_mode = #tpu.pipeline_mode<synchronous>, transform_indices = @transform_3, window_bounds = array<i64: 32, 96>}, {pipeline_mode = #tpu.pipeline_mode<synchronous>, transform_indices = @transform_4, window_bounds = array<i64: 32, 1>}, {pipeline_mode = #tpu.pipeline_mode<synchronous>, transform_indices = @transform_5, window_bounds = array<i64: 3, 32>}, {pipeline_mode = #tpu.pipeline_mode<synchronous>, transform_indices = @transform_6, window_bounds = array<i64: 3, 1>}, {transform_indices = @transform_7, window_bounds = array<i64: 3, 256>}]} {
    %c0 = arith.constant 0 : index
    %c0_0 = arith.constant 0 : index
    %0 = vector.load %arg2[%c0, %c0_0] : memref<32x12xbf16, #tpu.memory_space<vmem>>, vector<32x12xbf16>
    %c0_1 = arith.constant 0 : index
    %c0_2 = arith.constant 0 : index
    %1 = vector.load %arg4[%c0_1, %c0_2] : memref<32x96xbf16, #tpu.memory_space<vmem>>, vector<32x96xbf16>
    %c0_3 = arith.constant 0 : index
    %c0_4 = arith.constant 0 : index
    %2 = vector.load %arg6[%c0_3, %c0_4] : memref<3x32xbf16, #tpu.memory_space<vmem>>, vector<3x32xbf16>
    %c0_5 = arith.constant 0 : index
    %c0_6 = arith.constant 0 : index
    %3 = vector.load %arg3[%c0_5, %c0_6] : memref<32x1xf32, #tpu.memory_space<vmem>>, vector<32x1xf32>
    %c0_7 = arith.constant 0 : index
    %c0_8 = arith.constant 0 : index
    %4 = vector.load %arg5[%c0_7, %c0_8] : memref<32x1xf32, #tpu.memory_space<vmem>>, vector<32x1xf32>
    %c0_9 = arith.constant 0 : index
    %c0_10 = arith.constant 0 : index
    %5 = vector.load %arg7[%c0_9, %c0_10] : memref<3x1xf32, #tpu.memory_space<vmem>>, vector<3x1xf32>
    %c0_11 = arith.constant 0 : index
    %c0_12 = arith.constant 0 : index
    %6 = vector.load %arg1[%c0_11, %c0_12] : memref<4x256xbf16, #tpu.memory_space<vmem>>, vector<4x256xbf16>
    %cst = arith.constant 0.000000e+00 : bf16
    %7 = vector.broadcast %cst : bf16 to vector<4x1xbf16>
    %8 = vector.extract_strided_slice %6 {offsets = [0, 1], sizes = [4, 255], strides = [1, 1]} : vector<4x256xbf16> to vector<4x255xbf16>
    %9 = tpu.concatenate %8, %7 in 1 : vector<4x255xbf16>, vector<4x1xbf16> -> vector<4x256xbf16>
    %cst_13 = arith.constant 0.000000e+00 : bf16
    %10 = vector.broadcast %cst_13 : bf16 to vector<4x2xbf16>
    %11 = vector.extract_strided_slice %6 {offsets = [0, 2], sizes = [4, 254], strides = [1, 1]} : vector<4x256xbf16> to vector<4x254xbf16>
    %12 = tpu.concatenate %11, %10 in 1 : vector<4x254xbf16>, vector<4x2xbf16> -> vector<4x256xbf16>
    %13 = tpu.concatenate %6, %9, %12 in 0 : vector<4x256xbf16>, vector<4x256xbf16>, vector<4x256xbf16> -> vector<12x256xbf16>
    %cst_14 = arith.constant dense<0.000000e+00> : vector<32x256xf32>
    %14 = tpu.matmul %0, %13, %cst_14 {dimension_numbers = #tpu.dot_dimension_numbers<[1], [0], [0], [1], [0, 0, 1, 1], [], []>} : vector<32x12xbf16>, vector<12x256xbf16>, vector<32x256xf32> -> vector<32x256xf32>
    %15 = vector.broadcast %3 : vector<32x1xf32> to vector<32x256xf32>
    %16 = arith.addf %14, %15 : vector<32x256xf32>
    %cst_15 = arith.constant 0.000000e+00 : f32
    %17 = vector.broadcast %cst_15 : f32 to vector<32x256xf32>
    %18 = arith.maximumf %16, %17 : vector<32x256xf32>
    %19 = arith.truncf %18 : vector<32x256xf32> to vector<32x256xbf16>
    %cst_16 = arith.constant 0.000000e+00 : bf16
    %20 = vector.broadcast %cst_16 : bf16 to vector<32x2xbf16>
    %21 = vector.extract_strided_slice %19 {offsets = [0, 2], sizes = [32, 254], strides = [1, 1]} : vector<32x256xbf16> to vector<32x254xbf16>
    %22 = tpu.concatenate %21, %20 in 1 : vector<32x254xbf16>, vector<32x2xbf16> -> vector<32x256xbf16>
    %cst_17 = arith.constant 0.000000e+00 : bf16
    %23 = vector.broadcast %cst_17 : bf16 to vector<32x4xbf16>
    %24 = vector.extract_strided_slice %19 {offsets = [0, 4], sizes = [32, 252], strides = [1, 1]} : vector<32x256xbf16> to vector<32x252xbf16>
    %25 = tpu.concatenate %24, %23 in 1 : vector<32x252xbf16>, vector<32x4xbf16> -> vector<32x256xbf16>
    %26 = tpu.concatenate %19, %22, %25 in 0 : vector<32x256xbf16>, vector<32x256xbf16>, vector<32x256xbf16> -> vector<96x256xbf16>
    %cst_18 = arith.constant dense<0.000000e+00> : vector<32x256xf32>
    %27 = tpu.matmul %1, %26, %cst_18 {dimension_numbers = #tpu.dot_dimension_numbers<[1], [0], [0], [1], [0, 0, 1, 1], [], []>} : vector<32x96xbf16>, vector<96x256xbf16>, vector<32x256xf32> -> vector<32x256xf32>
    %28 = vector.broadcast %4 : vector<32x1xf32> to vector<32x256xf32>
    %29 = arith.addf %27, %28 : vector<32x256xf32>
    %30 = arith.extf %25 : vector<32x256xbf16> to vector<32x256xf32>
    %31 = arith.addf %29, %30 : vector<32x256xf32>
    %cst_19 = arith.constant 0.000000e+00 : f32
    %32 = vector.broadcast %cst_19 : f32 to vector<32x256xf32>
    %33 = arith.maximumf %31, %32 : vector<32x256xf32>
    %34 = arith.truncf %33 : vector<32x256xf32> to vector<32x256xbf16>
    %cst_20 = arith.constant 0.000000e+00 : bf16
    %35 = vector.broadcast %cst_20 : bf16 to vector<32x4xbf16>
    %36 = vector.extract_strided_slice %34 {offsets = [0, 4], sizes = [32, 252], strides = [1, 1]} : vector<32x256xbf16> to vector<32x252xbf16>
    %37 = tpu.concatenate %36, %35 in 1 : vector<32x252xbf16>, vector<32x4xbf16> -> vector<32x256xbf16>
    %cst_21 = arith.constant 0.000000e+00 : bf16
    %38 = vector.broadcast %cst_21 : bf16 to vector<32x8xbf16>
    %39 = vector.extract_strided_slice %34 {offsets = [0, 8], sizes = [32, 248], strides = [1, 1]} : vector<32x256xbf16> to vector<32x248xbf16>
    %40 = tpu.concatenate %39, %38 in 1 : vector<32x248xbf16>, vector<32x8xbf16> -> vector<32x256xbf16>
    %41 = tpu.concatenate %34, %37, %40 in 0 : vector<32x256xbf16>, vector<32x256xbf16>, vector<32x256xbf16> -> vector<96x256xbf16>
    %cst_22 = arith.constant dense<0.000000e+00> : vector<32x256xf32>
    %42 = tpu.matmul %1, %41, %cst_22 {dimension_numbers = #tpu.dot_dimension_numbers<[1], [0], [0], [1], [0, 0, 1, 1], [], []>} : vector<32x96xbf16>, vector<96x256xbf16>, vector<32x256xf32> -> vector<32x256xf32>
    %43 = vector.broadcast %4 : vector<32x1xf32> to vector<32x256xf32>
    %44 = arith.addf %42, %43 : vector<32x256xf32>
    %45 = arith.extf %40 : vector<32x256xbf16> to vector<32x256xf32>
    %46 = arith.addf %44, %45 : vector<32x256xf32>
    %cst_23 = arith.constant 0.000000e+00 : f32
    %47 = vector.broadcast %cst_23 : f32 to vector<32x256xf32>
    %48 = arith.maximumf %46, %47 : vector<32x256xf32>
    %49 = arith.truncf %48 : vector<32x256xf32> to vector<32x256xbf16>
    %cst_24 = arith.constant dense<0.000000e+00> : vector<3x256xf32>
    %50 = tpu.matmul %2, %49, %cst_24 {dimension_numbers = #tpu.dot_dimension_numbers<[1], [0], [0], [1], [0, 0, 1, 1], [], []>} : vector<3x32xbf16>, vector<32x256xbf16>, vector<3x256xf32> -> vector<3x256xf32>
    %51 = vector.broadcast %5 : vector<3x1xf32> to vector<3x256xf32>
    %52 = arith.addf %50, %51 : vector<3x256xf32>
    %c0_25 = arith.constant 0 : index
    %c0_26 = arith.constant 0 : index
    %53 = vector.load %arg8[%c0_25, %c0_26] : memref<3x256xf32, #tpu.memory_space<vmem>>, vector<3x256xf32>
    tpu.vector_store %arg8[%c0_25, %c0_26], %52 {strides = array<i32>} : memref<3x256xf32, #tpu.memory_space<vmem>>, vector<3x256xf32>,
    return
  }
  func.func @transform_0(%arg0: i32) -> (i32, i32) {
    %c0_i32 = arith.constant 0 : i32
    %c0_i32_0 = arith.constant 0 : i32
    return %c0_i32, %arg0 : i32, i32
  }
  func.func @transform_1(%arg0: i32) -> (i32, i32) {
    %c0_i32 = arith.constant 0 : i32
    %c0_i32_0 = arith.constant 0 : i32
    %c0_i32_1 = arith.constant 0 : i32
    return %c0_i32, %c0_i32_0 : i32, i32
  }
  func.func @transform_2(%arg0: i32) -> (i32, i32) {
    %c0_i32 = arith.constant 0 : i32
    %c0_i32_0 = arith.constant 0 : i32
    %c0_i32_1 = arith.constant 0 : i32
    return %c0_i32, %c0_i32_0 : i32, i32
  }
  func.func @transform_3(%arg0: i32) -> (i32, i32) {
    %c0_i32 = arith.constant 0 : i32
    %c0_i32_0 = arith.constant 0 : i32
    %c0_i32_1 = arith.constant 0 : i32
    return %c0_i32, %c0_i32_0 : i32, i32
  }
  func.func @transform_4(%arg0: i32) -> (i32, i32) {
    %c0_i32 = arith.constant 0 : i32
    %c0_i32_0 = arith.constant 0 : i32
    %c0_i32_1 = arith.constant 0 : i32
    return %c0_i32, %c0_i32_0 : i32, i32
  }
  func.func @transform_5(%arg0: i32) -> (i32, i32) {
    %c0_i32 = arith.constant 0 : i32
    %c0_i32_0 = arith.constant 0 : i32
    %c0_i32_1 = arith.constant 0 : i32
    return %c0_i32, %c0_i32_0 : i32, i32
  }
  func.func @transform_6(%arg0: i32) -> (i32, i32) {
    %c0_i32 = arith.constant 0 : i32
    %c0_i32_0 = arith.constant 0 : i32
    %c0_i32_1 = arith.constant 0 : i32
    return %c0_i32, %c0_i32_0 : i32, i32
  }
  func.func @transform_7(%arg0: i32) -> (i32, i32) {
    %c0_i32 = arith.constant 0 : i32
    %c0_i32_0 = arith.constant 0 : i32
    return %c0_i32, %arg0 : i32, i32
  }
}

</mosaic_0001>

<bundles_post_ra>
// kernel: tpu_custom_call.1
= control target key start
LH: loop header
LB: loop body
LE: loop exit
PB: predicated region body
PF: predicated region fallthrough
CT: control target
= control target key end

     0   :  { %12 = vsyncpa [#allocation3], 0  ;;  %s1266_s0 = inlined_call_operand.vmem [shape: bf16[4,512], index: 0, kind: input, shape index: {}]   ;;  %s1267_s1 = inlined_call_operand.vmem [shape: bf16[32,12], index: 1, kind: input, shape index: {}]   ;;  %s1268_s2 = inlined_call_operand.vmem [shape: f32[32,1], index: 2, kind: input, shape index: {}]   ;;  %s1269_s3 = inlined_call_operand.vmem [shape: bf16[32,96], index: 3, kind: input, shape index: {}]   ;;  %s1270_s4 = inlined_call_operand.vmem [shape: f32[32,1], index: 4, kind: input, shape index: {}]   ;;  %s1271_s5 = inlined_call_operand.vmem [shape: bf16[3,32], index: 5, kind: input, shape index: {}]   ;;  %s1272_s6 = inlined_call_operand.vmem [shape: f32[3,1], index: 6, kind: input, shape index: {}]   ;;  %s1273_s7 = inlined_call_operand.hbm [shape: f32[3,512], index: 7, kind: output, shape index: {}]  }
   0x1   :  { %14 = vsyncpa [#allocation3 + $0x1], 0  ;;  %s1057_s24 = smov 0   ;;  %s1059_s25 = smov 0  }
   0x2   :  { %s1061_s26 = smov 0   ;;  %s1063_s27 = smov 0  }
   0x3 LB: > { %s1078_s28 = sadd.s32 4294967295, %s1009_s27   ;;  %s865_s29 = sadd.s32 4294967294, %s1009_s27   ;;  %s1009_s27 = sphi %s1063_s27, %s1279_s27   ;;  %s1005_s26 = sphi %s1061_s26, %s1278_s26   ;;  %s1001_s25 = sphi %s1059_s25, %s1277_s25   ;;  %s997_s24 = sphi %s1057_s24, %s1276_s24  }
   0x4   : > { %s1082_s30 = sadd.s32 1, %s1009_s27   ;;  %s179_s8 = sadd.s32 1, %s1005_s26 }
   0x5   : > { %s176_s9 = ssub.s32 %s1009_s27, %s1082_s30  ;;  %p189_p0 = scmp.ne.s32.totalorder %s1005_s26, %s1001_s25 }
   0x6   : > { %p177_p1 = scmp.eq.s32.totalorder %s176_s9, 0  ;;  %p190_p2 = scmp.eq.s32.totalorder %s1078_s28, 1 }
   0x7   : > { %p195_p3 = scmp.ne.s32.totalorder %s1001_s25, %s997_s24  ;;  %p196_p4 = scmp.eq.s32.totalorder %s865_s29, 1 }
   0x8   : > { %s1093_s10 = scalar_select %p177_p1, %s1005_s26, %s179_s8  }
   0x9   : > { %p1095_p5 = por %p190_p2, %p189_p0  ;;  %p1099_p6 = por %p196_p4, %p195_p3 }
   0xa   : > { %p868_p7 = scmp.ge.s32.totalorder %s1009_s27, 1  ;;  %p241_p8 = scmp.lt.s32.totalorder %s1009_s27, 3 }
   0xc   : > { %p242_p9 = pnand %p868_p7, %p241_p8 }
   0xd   : > { %s870_s13 = sshll.u32 (!%p242_p9), %s1078_s28, 1  ;;  %s1012_s18 = smov (!%p242_p9), 126  }
   0xe   : > { %245 = sbr.rel (%p242_p9) target bundleno = 1292 (0x50c), region = 48  ;;  %p274_p10 = scmp.lt.s32.totalorder (!%p242_p9), %s870_s13, 3 }
   0xf   : > { %s1013_s19 = smov (!%p242_p9), 127   ;;  %s270_s23 = sand.u32 (!%p242_p9), 1, %s1001_s25  }
  0x10   : > { %s869_s29 = sshll.u32 (!%p242_p9), %s270_s23, 3  ;;  %s898_s8 = sshll.u32 (!%p242_p9), %s1078_s28, 7 }
  0x11   : > { %s272_s9 = scalar_lea.vmem (!%p242_p9), [#allocation2], %s869_s29  ;;  %s1231_s15 = scalar_lea.hbm (!%p242_p9), %s1273_s7, %s898_s8 }
  0x12   : > { %s792_s16 = scalar_lea.sflag (!%p242_p9), [#allocation3], %s270_s23  ;;  %s1016_s28 = smov (!%p242_p9), [#allocation2]  }
  0x13   : > { %s1281_s13 = smov (!%p274_p10, %s870_s13), 3  ;;  %v1011_v0 = vmov 0   ;;  %v293_v3 = vld [vmem:[%s1268_s2 + $0x18] sm:$0xff]  ;;  %v292_v4 = vld [vmem:[%s1268_s2 + $0x10] sm:$0xff]  ;;  %v290_v5 = vld [vmem:[%s1268_s2] sm:$0xff]  ;;  %vm323_vm0 = vcmask 1031168  }
  0x14   : > { %s871_s14 = sshll.u32 %s1281_s13, 1  ;;  %420 = vmatprep.mubr.bf16.mxu0 %v1011_v0  ;;  %944 = vset.pattern.permute.xlu1 %v1011_v0  ;;  %v291_v6 = vld [vmem:[%s1268_s2 + $0x8] sm:$0xff]  ;;  %vm313_vm1 = vcmask 1039360   ;;  %vm334_vm2 = vcmask 1041408   ;;  %vm341_vm3 = vcmask 1043456   ;;  %vm383_vm4 = vcmask 1045504  }
  0x15   : > { %s277_s17 = scalar_lea.vmem %s1266_s0, %s871_s14  ;;  %943 = vset.pattern.permute.xlu0 %v1011_v0  ;;  %564 = vmatprep.mubr.bf16.mxu1 %v1011_v0  ;;  %v945_v24 = vld [vmem:[%s1267_s1] sm:$0xff]   ;;  %vm376_vm5 = vcmask 97280   ;;  %v946_v25 = vld [vmem:[%s1267_s1 + $0x8] sm:$0xff]   ;;  %v296_v58 = vld [vmem:[%s1270_s4 + $0x10] sm:$0xff]  ;;  %vm483_vm6 = vcmask 1014784   ;;  %vm525_vm7 = vcmask 785408  }
  0x16   : > { %v872_v1 = vld.sshfl [vmem:[%s277_s17] sm:$0x33 pattern:$0x76325410]  ;;  %v297_v59 = vld [vmem:[%s1270_s4 + $0x18] sm:$0xff]  ;;  %v295_v61 = vld [vmem:[%s1270_s4 + $0x8] sm:$0xff] }
  0x17   : > { %319 = vrot.lane.b32.xlu1 %v872_v1, %s1012_s18  ;;  %309 = vrot.lane.b32.xlu0 %v872_v1, %s1013_s19  ;;  %v308_v2 = vcombine.high %v872_v1, %v872_v1  ;;  %v294_v60 = vld [vmem:[%s1270_s4] sm:$0xff]  ;;  %s1015_s17 = smov 120   ;;  %vm643_vm8 = vcmask 982016   ;;  %vm741_vm9 = vcmask 261120   ;;  %s806_s13 = sshll.u32 %s272_s9, 4  ;;  %s807_s13 = int_to_ptr.vmem [resolvable:$true] %s806_s13 }
  0x18   : > { %s953_s20 = sshll.u32 %s1016_s28, 4  ;;  %s954_s20 = int_to_ptr.vmem [resolvable:$false] %s953_s20 }
  0x19   : > { %s955_s21 = scalar_lea.vmem %s954_s20, 256  ;;  %p956_p0 = scmp.lt.s32.totalorder %s807_s13, %s954_s20 }
  0x1b   : > { %321 = vrot.lane.b32.xlu1 %v308_v2, %s1012_s18  ;;  %311 = vrot.lane.b32.xlu0 %v308_v2, %s1013_s19  ;;  %s1014_s19 = smov 124  }
  0x1f   : > { %363 = vperm.xlu1 %944, %v293_v3   ;;  %358 = vperm.xlu0 %943, %v292_v4  }
  0x23   : > { %348 = vperm.xlu1 %944, %v290_v5   ;;  %353 = vperm.xlu0 %943, %v291_v6  }
  0x89   : > { %v320_v7 = vpop.permute.xlu1 %319  ;;  %v310_v8 = vpop.permute.xlu0 %309 }
  0x8d   : > { %v322_v9 = vpop.permute.xlu1 %321  ;;  %v312_v10 = vpop.permute.xlu0 %311 }
  0x8e   : > { %v324_v11 = vsel %vm323_vm0, %v320_v7, %v322_v9  ;;  %v327_v12 = vsel %vm323_vm0, %v322_v9, 0  ;;  %v314_v13 = vsel %vm313_vm1, %v310_v8, %v312_v10  ;;  %v318_v14 = vsel %vm313_vm1, %v312_v10, 0 }
  0x8f   : > { %v332_v15 = vrot.slane %v324_v11, 4  ;;  %v333_v16 = vrot.slane %v327_v12, 4  ;;  %v329_v17 = vrot.slane %v314_v13, 6  ;;  %v330_v18 = vrot.slane %v318_v14, 6  ;;  %v1168_v11 = vld [vmem:[%s1269_s3] sm:$0xff]   ;;  %v1176_v12 = vld [vmem:[%s1269_s3 + $0x8] sm:$0xff]  }
  0x91   : > { %v340_v19 = vsel %vm334_vm2, %v308_v2, %v330_v18  ;;  %v337_v20 = vsel %vm334_vm2, %v872_v1, %v329_v17 }
  0x92   : > { %v345_v21 = vsel %vm341_vm3, %v340_v19, %v333_v16  ;;  %v343_v22 = vsel %vm341_vm3, %v337_v20, %v332_v15 }
  0x93   : > { %875 = vmatprep.subr.msk.bf16.mxu0 %vm383_vm4, %v345_v21  ;;  %v384_v23 = vsel %vm383_vm4, %v343_v22, 0 }
  0x94   : > { %403 = vmatpush1.bf16.msra.mxu0 %v384_v23 }
  0x97   : > { %876 = vmatmul.mubr.msk.bf16.vlgmr.msra.gmra.mxu0 %vm376_vm5, %v945_v24 }
  0x98   : > { %430 = vmatprep.mubr.bf16.mxu0 %v1011_v0 }
  0x9a   : > { %v359_v28 = vpop.permute.xlu0 %358  ;;  %v364_v30 = vpop.permute.xlu1 %363 }
  0x9e   : > { %v354_v33 = vpop.permute.xlu0 %353  ;;  %v349_v35 = vpop.permute.xlu1 %348 }
  0x9f   : > { %877 = vmatmul.mubr.msk.bf16.gmra.mxu0 %vm376_vm5, %v946_v25 }
  0xa0   : > { %687 = vmatprep.mubr.bf16.mxu0 %v1011_v0 }
 0x157   : > { %v422_v26 = vpop.f32.mrf.mxu0 }
 0x158   : > { %v423_v41 = vadd.f32 %v422_v26, %v349_v35 }
 0x159   : > { %v424_v27 = vpop.f32.mrf.mxu0 }
 0x15a   : > { %v425_v47 = vadd.f32 %v424_v27, %v349_v35  ;;  %v441_v52 = vmax.f32 %v423_v41, 0.0 }
 0x15b   : > { %v426_v29 = vpop.f32.mrf.mxu0 }
 0x15c   : > { %v427_v38 = vadd.f32 %v426_v29, %v354_v33  ;;  %v442_v55 = vmax.f32 %v425_v47, 0.0 }
 0x15d   : > { %v428_v31 = vpop.f32.mrf.mxu0 }
 0x15e   : > { %v429_v43 = vadd.f32 %v428_v31, %v354_v33  ;;  %v443_v48 = vmax.f32 %v427_v38, 0.0 }
 0x15f   : > { %v432_v32 = vpop.f32.mrf.mxu0 }
 0x160   : > { %v433_v36 = vadd.f32 %v432_v32, %v359_v28  ;;  %v444_v53 = vmax.f32 %v429_v43, 0.0  ;;  %v449_v56 = vpack.c.bf16 %v443_v48, %v441_v52 }
 0x161   : > { %v434_v34 = vpop.f32.mrf.mxu0 }
 0x162   : > { %v435_v39 = vadd.f32 %v434_v34, %v359_v28  ;;  %v445_v44 = vmax.f32 %v433_v36, 0.0  ;;  %v450_v57 = vpack.c.bf16 %v444_v53, %v442_v55 }
 0x163   : > { %v436_v37 = vpop.f32.mrf.mxu0 }
 0x164   : > { %v437_v40 = vadd.f32 %v436_v37, %v364_v30  ;;  %v446_v49 = vmax.f32 %v435_v39, 0.0 }
 0x165   : > { %v438_v42 = vpop.f32.mrf.mxu0 }
 0x166   : > { %v447_v45 = vmax.f32 %v437_v40, 0.0  ;;  %v439_v46 = vadd.f32 %v438_v42, %v364_v30 }
 0x168   : > { %v451_v50 = vpack.c.bf16 %v447_v45, %v445_v44  ;;  %v448_v51 = vmax.f32 %v439_v46, 0.0 }
 0x16a   : > { %v452_v54 = vpack.c.bf16 %v448_v51, %v446_v49  ;;  %479 = vrot.lane.b32.xlu1 %v451_v50, %s1014_s19 }
 0x16c   : > { %481 = vrot.lane.b32.xlu0 %v452_v54, %s1014_s19 }
 0x16e   : > { %475 = vrot.lane.b32.xlu1 %v449_v56, %s1014_s19 }
 0x170   : > { %477 = vrot.lane.b32.xlu0 %v450_v57, %s1014_s19 }
 0x172   : > { %461 = vrot.lane.b32.xlu1 %v451_v50, %s1012_s18 }
 0x174   : > { %463 = vrot.lane.b32.xlu0 %v452_v54, %s1012_s18 }
 0x176   : > { %457 = vrot.lane.b32.xlu1 %v449_v56, %s1012_s18 }
 0x178   : > { %459 = vrot.lane.b32.xlu0 %v450_v57, %s1012_s18 }
 0x17a   : > { %507 = vperm.xlu1 %944, %v296_v58  }
 0x17c   : > { %512 = vperm.xlu0 %943, %v297_v59  }
 0x17e   : > { %497 = vperm.xlu1 %944, %v294_v60  }
 0x180   : > { %502 = vperm.xlu0 %943, %v295_v61  }
 0x1dc   : > { %v480_v62 = vpop.permute.xlu1 %479 }
 0x1de   : > { %v482_v63 = vpop.permute.xlu0 %481 }
 0x1df   : > { %880 = vmatprep.subr.msk.bf16.mxu1 %vm483_vm6, %v482_v63  ;;  %v485_v1 = vsel %vm483_vm6, %v480_v62, %v482_v63  ;;  %v493_v20 = vsel %vm483_vm6, %v482_v63, 0  ;;  %v298_v63 = vld [vmem:[%s1272_s6] sm:$0x7] }
 0x1e0   : > { %v476_v2 = vpop.permute.xlu1 %475  ;;  %537 = vmatpush1.bf16.msra.mxu1 %v485_v1  ;;  %v589_v24 = vunpack.c.l.bf16 %v485_v1  ;;  %v591_v29 = vunpack.c.h.bf16 %v485_v1  ;;  %v590_v31 = vunpack.c.l.bf16 %v493_v20  ;;  %v592_v41 = vunpack.c.h.bf16 %v493_v20 }
 0x1e2   : > { %v478_v3 = vpop.permute.xlu0 %477 }
 0x1e3   : > { %881 = vmatprep.subr.msk.bf16.mxu1 %vm483_vm6, %v478_v3  ;;  %v484_v4 = vsel %vm483_vm6, %v476_v2, %v478_v3  ;;  %v490_v25 = vsel %vm483_vm6, %v478_v3, 0 }
 0x1e4   : > { %v462_v5 = vpop.permute.xlu1 %461  ;;  %539 = vmatpush1.bf16.msra.mxu1 %v484_v4  ;;  %v587_v33 = vunpack.c.h.bf16 %v484_v4  ;;  %v585_v37 = vunpack.c.l.bf16 %v484_v4  ;;  %v588_v39 = vunpack.c.h.bf16 %v490_v25  ;;  %v586_v47 = vunpack.c.l.bf16 %v490_v25 }
 0x1e6   : > { %v464_v6 = vpop.permute.xlu0 %463 }
 0x1e7   : > { %882 = vmatprep.subr.msk.bf16.mxu1 %vm323_vm0, %v464_v6  ;;  %v466_v7 = vsel %vm323_vm0, %v462_v5, %v464_v6 }
 0x1e8   : > { %541 = vmatpush1.bf16.msra.mxu1 %v466_v7  ;;  %v458_v8 = vpop.permute.xlu1 %457 }
 0x1ea   : > { %v460_v9 = vpop.permute.xlu0 %459 }
 0x1eb   : > { %883 = vmatprep.subr.msk.bf16.mxu1 %vm323_vm0, %v460_v9  ;;  %v465_v10 = vsel %vm323_vm0, %v458_v8, %v460_v9 }
 0x1ec   : > { %543 = vmatpush1.bf16.msra.mxu1 %v465_v10 }
 0x1ed   : > { %544 = vmatprep.subr.bf16.mxu1 %v452_v54 }
 0x1f0   : > { %545 = vmatpush1.bf16.msra.mxu1 %v451_v50 }
 0x1f1   : > { %546 = vmatprep.subr.bf16.mxu1 %v450_v57 }
 0x1f4   : > { %547 = vmatpush1.bf16.msra.mxu1 %v449_v56 }
 0x1f5   : > { %v1183_v17 = vpop.permute.xlu1 %507 }
 0x1f7   : > { %884 = vmatmul.mubr.msk.bf16.vlgmr.msra.gmra.mxu1 %vm525_vm7, %v1168_v11  ;;  %v1181_v15 = vpop.permute.xlu0 %512 }
 0x1f8   : > { %574 = vmatprep.mubr.bf16.mxu1 %v1011_v0 }
 0x1f9   : > { %v1190_v26 = vpop.permute.xlu1 %497 }
 0x1fb   : > { %v1187_v22 = vpop.permute.xlu0 %502 }
 0x1ff   : > { %885 = vmatmul.mubr.msk.bf16.gmra.mxu1 %vm525_vm7, %v1176_v12 }
 0x200   : > { %777 = vmatprep.mubr.bf16.mxu1 %v1011_v0 }
 0x2b7   : > { %v566_v13 = vpop.f32.mrf.mxu1 }
 0x2b8   : > { %v567_v30 = vadd.f32 %v566_v13, %v1190_v26 }
 0x2b9   : > { %v568_v14 = vpop.f32.mrf.mxu1 }
 0x2ba   : > { %v569_v38 = vadd.f32 %v568_v14, %v1190_v26  ;;  %v593_v46 = vadd.f32 %v585_v37, %v567_v30 }
 0x2bb   : > { %v570_v16 = vpop.f32.mrf.mxu1 }
 0x2bc   : > { %v571_v27 = vadd.f32 %v570_v16, %v1187_v22  ;;  %v594_v52 = vadd.f32 %v586_v47, %v569_v38  ;;  %v601_v57 = vmax.f32 %v593_v46, 0.0 }
 0x2bd   : > { %v572_v18 = vpop.f32.mrf.mxu1 }
 0x2be   : > { %v573_v34 = vadd.f32 %v572_v18, %v1187_v22  ;;  %v595_v42 = vadd.f32 %v587_v33, %v571_v27  ;;  %v602_v60 = vmax.f32 %v594_v52, 0.0 }
 0x2bf   : > { %v576_v19 = vpop.f32.mrf.mxu1 }
 0x2c0   : > { %v577_v21 = vadd.f32 %v576_v19, %v1183_v17  ;;  %v596_v48 = vadd.f32 %v588_v39, %v573_v34  ;;  %v603_v53 = vmax.f32 %v595_v42, 0.0 }
 0x2c1   : > { %v578_v23 = vpop.f32.mrf.mxu1 }
 0x2c2   : > { %v579_v28 = vadd.f32 %v578_v23, %v1183_v17  ;;  %v597_v35 = vadd.f32 %v589_v24, %v577_v21  ;;  %v604_v58 = vmax.f32 %v596_v48, 0.0  ;;  %v609_v61 = vpack.c.bf16 %v603_v53, %v601_v57 }
 0x2c3   : > { %v580_v32 = vpop.f32.mrf.mxu1 }
 0x2c4   : > { %v581_v36 = vadd.f32 %v580_v32, %v1181_v15  ;;  %v598_v43 = vadd.f32 %v590_v31, %v579_v28  ;;  %v605_v49 = vmax.f32 %v597_v35, 0.0  ;;  %v610_v62 = vpack.c.bf16 %v604_v58, %v602_v60  ;;  %v289_v58 = vld [vmem:[%s1271_s5] sm:$0x3] }
 0x2c5   : > { %v582_v40 = vpop.f32.mrf.mxu1 }
 0x2c6   : > { %v599_v44 = vadd.f32 %v591_v29, %v581_v36  ;;  %v583_v45 = vadd.f32 %v582_v40, %v1181_v15  ;;  %v606_v54 = vmax.f32 %v598_v43, 0.0 }
 0x2c8   : > { %v607_v50 = vmax.f32 %v599_v44, 0.0  ;;  %v600_v51 = vadd.f32 %v592_v41, %v583_v45 }
 0x2ca   : > { %v608_v55 = vmax.f32 %v600_v51, 0.0  ;;  %v611_v56 = vpack.c.bf16 %v607_v50, %v605_v49 }
 0x2cc   : > { %639 = vrot.lane.b32.xlu1 %v611_v56, %s1015_s17  ;;  %v612_v59 = vpack.c.bf16 %v608_v55, %v606_v54 }
 0x2ce   : > { %641 = vrot.lane.b32.xlu0 %v612_v59, %s1015_s17 }
 0x2d0   : > { %635 = vrot.lane.b32.xlu1 %v609_v61, %s1015_s17 }
 0x2d2   : > { %637 = vrot.lane.b32.xlu0 %v610_v62, %s1015_s17  ;;  %s949_s17 = scalar_lea.vmem %s807_s13, 128 }
 0x2d3   : > { %p950_p11 = scmp.ne.s32.totalorder %s807_s13, %s949_s17  ;;  %p957_p1 = scmp.lt.s32.totalorder %s955_s21, %s949_s17 }
 0x2d4   : > { %621 = vrot.lane.b32.xlu1 %v611_v56, %s1014_s19 }
 0x2d5   : > { %p951_p12 = pnand %p950_p11, %p1095_p5  ;;  %p958_p2 = por %p957_p1, %p956_p0 }
 0x2d6   : > { %623 = vrot.lane.b32.xlu0 %v612_v59, %s1014_s19 }
 0x2d7   : > { %p952_p13 = pneg %p951_p12 }
 0x2d8   : > { %617 = vrot.lane.b32.xlu1 %v609_v61, %s1014_s19 }
 0x2d9   : > { %p959_p3 = pnand %p958_p2, %p952_p13 }
 0x2da   : > { %619 = vrot.lane.b32.xlu0 %v610_v62, %s1014_s19 }
 0x2dc   : > { %738 = vperm.xlu1 %944, %v298_v63  }
 0x33e   : > { %v640_v1 = vpop.permute.xlu1 %639 }
 0x340   : > { %v642_v2 = vpop.permute.xlu0 %641 }
 0x341   : > { %v653_v3 = vsel %vm643_vm8, %v642_v2, 0  ;;  %886 = vmatprep.subr.msk.bf16.mxu0 %vm643_vm8, %v642_v2  ;;  %v645_v4 = vsel %vm643_vm8, %v640_v1, %v642_v2 }
 0x342   : > { %v636_v5 = vpop.permute.xlu1 %635  ;;  %660 = vmatpush1.bf16.msra.mxu0 %v645_v4  ;;  %v713_v30 = vunpack.c.l.bf16 %v653_v3  ;;  %v712_v35 = vunpack.c.l.bf16 %v645_v4  ;;  %v715_v37 = vunpack.c.h.bf16 %v653_v3 }
 0x344   : > { %v638_v6 = vpop.permute.xlu0 %637 }
 0x345   : > { %v650_v7 = vsel %vm643_vm8, %v638_v6, 0  ;;  %887 = vmatprep.subr.msk.bf16.mxu0 %vm643_vm8, %v638_v6  ;;  %v644_v8 = vsel %vm643_vm8, %v636_v5, %v638_v6 }
 0x346   : > { %v622_v9 = vpop.permute.xlu1 %621  ;;  %662 = vmatpush1.bf16.msra.mxu0 %v644_v8  ;;  %v709_v33 = vunpack.c.l.bf16 %v650_v7  ;;  %v710_v42 = vunpack.c.h.bf16 %v644_v8  ;;  %v708_v46 = vunpack.c.l.bf16 %v644_v8 }
 0x348   : > { %v624_v10 = vpop.permute.xlu0 %623 }
 0x349   : > { %v626_v13 = vsel %vm483_vm6, %v622_v9, %v624_v10  ;;  %888 = vmatprep.subr.msk.bf16.mxu0 %vm483_vm6, %v624_v10 }
 0x34a   : > { %664 = vmatpush1.bf16.msra.mxu0 %v626_v13  ;;  %v618_v14 = vpop.permute.xlu1 %617 }
 0x34c   : > { %v620_v16 = vpop.permute.xlu0 %619 }
 0x34d   : > { %v625_v18 = vsel %vm483_vm6, %v618_v14, %v620_v16  ;;  %889 = vmatprep.subr.msk.bf16.mxu0 %vm483_vm6, %v620_v16 }
 0x34e   : > { %666 = vmatpush1.bf16.msra.mxu0 %v625_v18 }
 0x34f   : > { %667 = vmatprep.subr.bf16.mxu0 %v612_v59 }
 0x352   : > { %668 = vmatpush1.bf16.msra.mxu0 %v611_v56 }
 0x353   : > { %669 = vmatprep.subr.bf16.mxu0 %v610_v62 }
 0x356   : > { %670 = vmatpush1.bf16.msra.mxu0 %v609_v61 }
 0x357   : > { %v739_v60 = vpop.permute.xlu1 %738 }
 0x359   : > { %890 = vmatmul.mubr.msk.bf16.vlgmr.msra.gmra.mxu0 %vm525_vm7, %v1168_v11 }
 0x35a   : > { %697 = vmatprep.mubr.bf16.mxu0 %v1011_v0  ;;  %v711_v0 = vunpack.c.h.bf16 %v650_v7 }
 0x361   : > { %891 = vmatmul.mubr.msk.bf16.gmra.mxu0 %vm525_vm7, %v1176_v12  ;;  %v714_v12 = vunpack.c.h.bf16 %v645_v4 }
 0x419   : > { %v689_v19 = vpop.f32.mrf.mxu0 }
 0x41b   : > { %v691_v20 = vpop.f32.mrf.mxu0 }
 0x41c   : > { %v692_v11 = vadd.f32 %v691_v20, %v1190_v26 }
 0x41d   : > { %v693_v21 = vpop.f32.mrf.mxu0 }
 0x41e   : > { %v694_v34 = vadd.f32 %v693_v21, %v1187_v22  ;;  %v717_v44 = vadd.f32 %v709_v33, %v692_v11 }
 0x41f   : > { %v695_v23 = vpop.f32.mrf.mxu0 }
 0x420   : > { %v696_v27 = vadd.f32 %v695_v23, %v1187_v22  ;;  %v718_v47 = vadd.f32 %v710_v42, %v694_v34  ;;  %v725_v53 = vmax.f32 %v717_v44, 0.0 }
 0x421   : > { %v699_v24 = vpop.f32.mrf.mxu0 }
 0x422   : > { %v700_v29 = vadd.f32 %v699_v24, %v1183_v17  ;;  %v719_v38 = vadd.f32 %v711_v0, %v696_v27  ;;  %v726_v55 = vmax.f32 %v718_v47, 0.0 }
 0x423   : > { %v701_v25 = vpop.f32.mrf.mxu0 }
 0x424   : > { %v702_v28 = vadd.f32 %v701_v25, %v1183_v17  ;;  %v690_v17 = vadd.f32 %v689_v19, %v1190_v26  ;;  %v720_v43 = vadd.f32 %v712_v35, %v700_v29  ;;  %v727_v49 = vmax.f32 %v719_v38, 0.0 }
 0x425   : > { %v703_v31 = vpop.f32.mrf.mxu0 }
 0x426   : > { %v704_v32 = vadd.f32 %v703_v31, %v1181_v15  ;;  %v721_v39 = vadd.f32 %v713_v30, %v702_v28  ;;  %v716_v51 = vadd.f32 %v708_v46, %v690_v17  ;;  %v728_v52 = vmax.f32 %v720_v43, 0.0 }
 0x427   : > { %v705_v36 = vpop.f32.mrf.mxu0 }
 0x428   : > { %v722_v40 = vadd.f32 %v714_v12, %v704_v32  ;;  %v706_v41 = vadd.f32 %v705_v36, %v1181_v15  ;;  %v729_v50 = vmax.f32 %v721_v39, 0.0  ;;  %v733_v15 = vpack.c.bf16 %v727_v49, %v725_v53 }
 0x429   : > { %v724_v26 = vmax.f32 %v716_v51, 0.0 }
 0x42a   : > { %v723_v45 = vadd.f32 %v715_v37, %v706_v41  ;;  %v730_v48 = vmax.f32 %v722_v40, 0.0 }
 0x42b   : > { %v732_v57 = vpack.c.bf16 %v726_v55, %v724_v26 }
 0x42c   : > { %v731_v22 = vmax.f32 %v723_v45, 0.0  ;;  %v734_v56 = vpack.c.bf16 %v730_v48, %v728_v52 }
 0x42e   : > { %v735_v54 = vpack.c.bf16 %v731_v22, %v729_v50 }
 0x430   : > { %757 = vmatprep.subr.bf16.mxu1 %v735_v54 }
 0x431   : > { %758 = vmatpush1.bf16.msra.mxu1 %v734_v56 }
 0x432   : > { %759 = vmatprep.subr.bf16.mxu1 %v733_v15 }
 0x435   : > { %760 = vmatpush1.bf16.msra.mxu1 %v732_v57 }
 0x438   : > { %892 = vmatmul.mubr.msk.bf16.vlgmr.msra.gmra.mxu1 %vm741_vm9, %v289_v58 }
 0x4f8   : > { %v779_v59 = vpop.f32.mrf.mxu1 }
 0x4f9   : > { %v780_v62 = vadd.f32 %v779_v59, %v739_v60 }
 0x4fa   : > { %v781_v61 = vpop.f32.mrf.mxu1 }
 0x4fb   : > { %v782_v63 = vadd.f32 %v781_v61, %v739_v60 }
 0x4fc   : > { %v783_v1 = vpop.f32.mrf.mxu1 }
 0x4fd   : > { %v788_v2 = vcombine.low %v780_v62, %v782_v63 }
 0x4fe   : > { %v784_v3 = vpop.f32.mrf.mxu1 }
 0x4ff   : > { %790 = vst [vmem:[%s272_s9] sm:$0x77] %v788_v2 }
 0x500   : > { %962 = shalt.err (!%p959_p3)
}
 0x501   : > { %s963_s19 = scalar_lea.hbm %s1231_s15, 128  ;;  %s967_s29 = scalar_lea.hbm %s1273_s7, 256 }
 0x502   : > { %p964_p4 = scmp.ne.s32.totalorder %s1231_s15, %s963_s19  ;;  %p968_p9 = scmp.lt.s32.totalorder %s1231_s15, %s1273_s7 }
 0x503   : > { %p969_p10 = scmp.lt.s32.totalorder %s967_s29, %s963_s19 }
 0x504   : > { %p965_p7 = pnand %p964_p4, %p1095_p5 }
 0x505   : > { %p970_p11 = por %p969_p10, %p968_p9 }
 0x506   : > { %p966_p8 = pneg %p965_p7 }
 0x508   : > { %p971_p12 = pnand %p970_p11, %p966_p8 }
 0x50a   : > { %974 = shalt.err (!%p971_p12)
}
 0x50b   : > { %899 = dma.vmem_to_hbm [thread:$0]  (%p1095_p5), %s807_s13, 128, %s1231_s15, %s792_s16  }
 0x50c PF: > { %p905_p13 = scmp.ge.s32.totalorder %s1009_s27, 2  ;;  %s818_s18 = sand.u32 1, %s997_s24  }
 0x50d   : > { %s819_s14 = scalar_lea.sflag [#allocation3], %s818_s18 }
 0x50e   : > { %p902_p0 = pnand %p905_p13, %p1099_p6 }
 0x510   : > { %p903_p1 = pneg %p902_p0 }
 0x512   : > { %992 = dma.done.wait (%p903_p1), %s819_s14, 128  }
 0x513   : > { %994 = vsyncadd (%p903_p1), %s819_s14, 4294967168  ;;  %p17_p2 = scmp.ge.s32.totalorder %s1082_s30, 4   ;;  %s1276_s24 = smov %s1001_s25 }
 0x514   : > { %s1277_s25 = smov %s1005_s26  ;;  %s1278_s26 = smov %s1093_s10 }
 0x515   : > { %s1279_s27 = smov %s1082_s30  ;;  %19 = sbr.rel (!%p17_p2) target bundleno = 3 (0x3), region = 83 }
 0x51a   :  { %824 = vsyncpa [#allocation3], 1 }
 0x51b   :  { %826 = vsyncpa [#allocation3 + $0x1], 1 }

</bundles_post_ra>
